<compile_context>
chip_gen: v7x
topology: tpu7x:2x2x1
jax: 0.10.0
libtpu: 0.0.40
codegen_flags: <defaults>
</compile_context>

<pallas_src>
import functools
import math

import jax
import jax.numpy as jnp
from jax.experimental import pallas as pl
from jax.experimental.pallas import tpu as pltpu


def _round_up(v, m):
    return (v + m - 1) // m * m


def _siren_kernel(x_ref, wt_ref, b_ref, o_ref, *, w0, is_last):
    # x_ref : (tm, in_f)       streamed row tile of inputs
    # wt_ref: (in_f, out_f_p)  full transposed weight, VMEM-resident
    # b_ref : (1, out_f_p)     bias row, VMEM-resident
    # o_ref : (tm, out_f_p)    lane-dense output tile
    y = jnp.dot(x_ref[...], wt_ref[...], preferred_element_type=jnp.float32)
    y = y + b_ref[...]                      # VPU epilogue, hidden under MXU/DMA
    if is_last:
        o_ref[...] = y + 0.5
    else:
        o_ref[...] = w0 * y


def siren_layer(x, wt, bias, *, w0=200.0, is_last=False, tm=512,
                vmem_budget_bytes=48 * 1024 * 1024):
    """SIREN layer forward: (w0 *) (x @ wt + bias), or (...) + 0.5 if is_last.

    x   : (N, in_f)     float32 coordinates/activations.
    wt  : (in_f, out_f) float32 — PRE-TRANSPOSED weight (PyTorch weight.T),
                        transposed once at init, not per call.
    bias: (out_f,)      float32.
    """
    N, in_f = x.shape
    in_f_w, out_f = wt.shape
    assert in_f == in_f_w, "weight / input feature mismatch"

    # ---- Lane-dense output: pad out_f to a multiple of 128 ----------------
    out_f_p = _round_up(out_f, 128)
    if out_f_p != out_f:
        wt = jnp.pad(wt, ((0, 0), (0, out_f_p - out_f)))
        bias = jnp.pad(bias, (0, out_f_p - out_f))
    b2 = bias.reshape(1, out_f_p)

    # ---- Row tile: big, multiple of 8 sublanes, capped by VMEM budget -----
    bytes_per_row = (2 * in_f + 2 * out_f_p) * 4        # double-buffered x + out
    resident = (in_f * out_f_p + out_f_p) * 4           # weight + bias (resident)
    tm_cap = max(8, ((vmem_budget_bytes - resident) // bytes_per_row) // 8 * 8)
    tm = min(_round_up(max(tm, 8), 8), tm_cap, _round_up(N, 8))

    # ---- Pad rows to a tile multiple (no N % tm requirement) --------------
    N_p = _round_up(N, tm)
    if N_p != N:
        x = jnp.pad(x, ((0, N_p - N), (0, 0)))

    vmem_limit = int(min(resident + bytes_per_row * tm + (4 << 20), 56 << 20))
    vmem_limit = max(vmem_limit, 16 << 20)

    kernel = functools.partial(_siren_kernel, w0=float(w0), is_last=bool(is_last))

    out_p = pl.pallas_call(
        kernel,
        out_shape=jax.ShapeDtypeStruct((N_p, out_f_p), jnp.float32),
        grid_spec=pltpu.PrefetchScalarGridSpec(
            num_scalar_prefetch=0,
            grid=(pl.cdiv(N_p, tm),),
            in_specs=[
                pl.BlockSpec((tm, in_f), lambda i: (i, 0)),       # streamed rows
                pl.BlockSpec((in_f, out_f_p), lambda i: (0, 0)),  # resident W^T
                pl.BlockSpec((1, out_f_p), lambda i: (0, 0)),     # resident bias
            ],
            out_specs=pl.BlockSpec((tm, out_f_p), lambda i: (i, 0)),
        ),
        compiler_params=pltpu.CompilerParams(
            dimension_semantics=("parallel",),   # rows split across TCs (v7x)
            vmem_limit_bytes=vmem_limit,
        ),
    )(x, wt, b2)

    # Drop row and feature padding.
    return out_p[:N, :out_f]


def init_siren_params(key, in_f, out_f, *, w0=200.0, is_first=False):
    """Parameter init matching the PyTorch __init__.

    Returns the weight ALREADY transposed to (in_f, out_f) so the transpose is
    paid once at init, never per forward call.
    """
    bound = (1.0 / in_f) if is_first else (math.sqrt(6.0 / in_f) / w0)
    weight = jax.random.uniform(
        key, (out_f, in_f), dtype=jnp.float32, minval=-bound, maxval=bound
    )
    bias = jnp.zeros((out_f,), dtype=jnp.float32)
    return weight.T, bias                    # (in_f, out_f), (out_f,)


def siren_layer_ref(x, wt, bias, *, w0=200.0, is_last=False):
    y = x @ wt + bias
    return y + 0.5 if is_last else w0 * y


if __name__ == "__main__":
    key = jax.random.PRNGKey(0)
    k_x, k_w1, k_w2 = jax.random.split(key, 3)

    # Small but representative shapes:
    #   N=300   -> not a multiple of the tile (exercises row padding / cdiv)
    #   hidden=48, out=3 -> exercise out_f padding to 128 (lane-dense stores)
    N, in_f, hidden, out_ch = 300, 64, 48, 3
    w0 = 200.0

    x = jax.random.normal(k_x, (N, in_f), dtype=jnp.float32)

    wt1, b1 = init_siren_params(k_w1, in_f, hidden, w0=w0, is_first=True)
    wt2, b2 = init_siren_params(k_w2, hidden, out_ch, w0=w0, is_first=False)

    # Hidden layer (w0 * linear) then last layer (linear + 0.5).
    y1 = siren_layer(x, wt1, b1, w0=w0, is_last=False)
    y2 = siren_layer(y1, wt2, b2, w0=w0, is_last=True)
    jax.block_until_ready(y2)

    # Correctness check vs. pure-JAX reference.
    r1 = siren_layer_ref(x, wt1, b1, w0=w0, is_last=False)
    r2 = siren_layer_ref(r1, wt2, b2, w0=w0, is_last=True)
    assert y1.shape == r1.shape and y2.shape == r2.shape
    assert jnp.allclose(y1, r1, rtol=1e-5, atol=5e-5), "hidden layer mismatch"
    assert jnp.allclose(y2, r2, rtol=1e-5, atol=5e-5), "last layer mismatch"

    print("KERNEL_OK")
</pallas_src>

<mosaic_0001>
module attributes {stable_mosaic.version = 11 : i64} {
  func.func @_siren_kernel(%arg0: i32, %arg1: memref<304x64xf32, #tpu.memory_space<vmem>>, %arg2: memref<64x128xf32, #tpu.memory_space<vmem>>, %arg3: memref<1x128xf32, #tpu.memory_space<vmem>>, %arg4: memref<304x128xf32, #tpu.memory_space<vmem>>) attributes {dimension_semantics = [#tpu.dimension_semantics<parallel>], iteration_bounds = array<i64: 1>, scalar_prefetch = 0 : i64, scratch_operands = 0 : i64, tpu.core_type = #tpu.core_type<tc>, window_params = [{transform_indices = @transform_0, window_bounds = array<i64: 304, 64>}, {pipeline_mode = #tpu.pipeline_mode<synchronous>, transform_indices = @transform_1, window_bounds = array<i64: 64, 128>}, {pipeline_mode = #tpu.pipeline_mode<synchronous>, transform_indices = @transform_2, window_bounds = array<i64: 1, 128>}, {transform_indices = @transform_3, window_bounds = array<i64: 304, 128>}]} {
    %c0 = arith.constant 0 : index
    %c0_0 = arith.constant 0 : index
    %0 = vector.load %arg1[%c0, %c0_0] : memref<304x64xf32, #tpu.memory_space<vmem>>, vector<304x64xf32>
    %c0_1 = arith.constant 0 : index
    %c0_2 = arith.constant 0 : index
    %1 = vector.load %arg2[%c0_1, %c0_2] : memref<64x128xf32, #tpu.memory_space<vmem>>, vector<64x128xf32>
    %cst = arith.constant dense<0.000000e+00> : vector<304x128xf32>
    %2 = tpu.matmul %0, %1, %cst {dimension_numbers = #tpu.dot_dimension_numbers<[1], [0], [0], [1], [0, 0, 1, 1], [], []>} : vector<304x64xf32>, vector<64x128xf32>, vector<304x128xf32> -> vector<304x128xf32>
    %c0_3 = arith.constant 0 : index
    %c0_4 = arith.constant 0 : index
    %3 = vector.load %arg3[%c0_3, %c0_4] : memref<1x128xf32, #tpu.memory_space<vmem>>, vector<1x128xf32>
    %4 = vector.broadcast %3 : vector<1x128xf32> to vector<304x128xf32>
    %5 = arith.addf %2, %4 : vector<304x128xf32>
    %cst_5 = arith.constant 2.000000e+02 : f32
    %6 = vector.broadcast %cst_5 : f32 to vector<304x128xf32>
    %7 = arith.mulf %6, %5 : vector<304x128xf32>
    %c0_6 = arith.constant 0 : index
    %c0_7 = arith.constant 0 : index
    %8 = vector.load %arg4[%c0_6, %c0_7] : memref<304x128xf32, #tpu.memory_space<vmem>>, vector<304x128xf32>
    tpu.vector_store %arg4[%c0_6, %c0_7], %7 {strides = array<i32>} : memref<304x128xf32, #tpu.memory_space<vmem>>, vector<304x128xf32>,
    return
  }
  func.func @transform_0(%arg0: i32) -> (i32, i32) {
    %c0_i32 = arith.constant 0 : i32
    %c0_i32_0 = arith.constant 0 : i32
    return %arg0, %c0_i32 : i32, i32
  }
  func.func @transform_1(%arg0: i32) -> (i32, i32) {
    %c0_i32 = arith.constant 0 : i32
    %c0_i32_0 = arith.constant 0 : i32
    %c0_i32_1 = arith.constant 0 : i32
    return %c0_i32, %c0_i32_0 : i32, i32
  }
  func.func @transform_2(%arg0: i32) -> (i32, i32) {
    %c0_i32 = arith.constant 0 : i32
    %c0_i32_0 = arith.constant 0 : i32
    %c0_i32_1 = arith.constant 0 : i32
    return %c0_i32, %c0_i32_0 : i32, i32
  }
  func.func @transform_3(%arg0: i32) -> (i32, i32) {
    %c0_i32 = arith.constant 0 : i32
    %c0_i32_0 = arith.constant 0 : i32
    return %arg0, %c0_i32 : i32, i32
  }
}

</mosaic_0001>

<bundles_post_ra>
// kernel: tpu_custom_call.1
= control target key start
LH: loop header
LB: loop body
LE: loop exit
PB: predicated region body
PF: predicated region fallthrough
CT: control target
= control target key end

     0   :  { %vm68_vm0 = vcmask 523264   ;;  %s993_s0 = inlined_call_operand.vmem [shape: f32[304,64], index: 0, kind: input, shape index: {}]   ;;  %s994_s1 = inlined_call_operand.vmem [shape: f32[64,128], index: 1, kind: input, shape index: {}]   ;;  %s995_s2 = inlined_call_operand.vmem [shape: f32[1,128], index: 2, kind: input, shape index: {}]   ;;  %s996_s3 = inlined_call_operand.hbm [shape: f32[304,128], index: 3, kind: output, shape index: {}]  }
   0x1   :  { %v53_v0 = vld [vmem:[%s994_s1] sm:$0xff]  ;;  %v54_v1 = vld [vmem:[%s994_s1 + $0x8] sm:$0xff]  ;;  %v55_v2 = vld [vmem:[%s994_s1 + $0x10] sm:$0xff] }
   0x2   :  { %v688_v3 = vpack.c.bf16 %v54_v1, %v53_v0  ;;  %v56_v4 = vld [vmem:[%s994_s1 + $0x18] sm:$0xff]  ;;  %v57_v6 = vld [vmem:[%s994_s1 + $0x20] sm:$0xff]  ;;  %v58_v7 = vld [vmem:[%s994_s1 + $0x28] sm:$0xff] }
   0x3   :  { %v692_v5 = vpack.c.bf16 %v56_v4, %v55_v2  ;;  %v15_v8 = vld [vmem:[%s993_s0] sm:$0xff]  ;;  %v696_v10 = vpack.c.bf16 %v58_v7, %v57_v6  ;;  %v59_v11 = vld [vmem:[%s994_s1 + $0x30] sm:$0xff]  ;;  %v60_v12 = vld [vmem:[%s994_s1 + $0x38] sm:$0xff] }
   0x4   :  { %689 = vmatprep.subr.bf16.mxu0 %v688_v3  ;;  %704 = vmatprep.subr.bf16.mxu1 %v688_v3  ;;  %v35_v9 = vld [vmem:[%s993_s0 + $0xa0] sm:$0xff]  ;;  %v700_v13 = vpack.c.bf16 %v60_v12, %v59_v11 }
   0x5   :  { %691 = vmatpush3.bf16.msra.mxu0 %v688_v3  ;;  %708 = vmatpush3.bf16.msra.mxu1 %v688_v3 }
   0x6   :  { %693 = vmatprep.subr.bf16.mxu0 %v692_v5  ;;  %705 = vmatprep.subr.bf16.mxu1 %v692_v5 }
   0x7   :  { %631 = vmatprep.mubr.msk.f32.mxu0 %vm68_vm0, %v15_v8  ;;  %661 = vmatprep.mubr.msk.f32.mxu1 %vm68_vm0, %v35_v9 }
   0x9   :  { %695 = vmatpush3.bf16.msra.mxu0 %v692_v5  ;;  %709 = vmatpush3.bf16.msra.mxu1 %v692_v5 }
   0xa   :  { %697 = vmatprep.subr.bf16.mxu0 %v696_v10  ;;  %706 = vmatprep.subr.bf16.mxu1 %v696_v10 }
   0xd   :  { %699 = vmatpush3.bf16.msra.mxu0 %v696_v10  ;;  %710 = vmatpush3.bf16.msra.mxu1 %v696_v10 }
   0xe   :  { %701 = vmatprep.subr.bf16.mxu0 %v700_v13  ;;  %707 = vmatprep.subr.bf16.mxu1 %v700_v13 }
   0xf   :  { %8 = vsyncpa [#allocation3], 0  ;;  %v16_v14 = vld [vmem:[%s993_s0 + $0x8] sm:$0xff]  ;;  %v17_v16 = vld [vmem:[%s993_s0 + $0x10] sm:$0xff] }
  0x10   :  { %v36_v15 = vld [vmem:[%s993_s0 + $0xa8] sm:$0xff]  ;;  %v37_v17 = vld [vmem:[%s993_s0 + $0xb0] sm:$0xff]  ;;  %v18_v18 = vld [vmem:[%s993_s0 + $0x18] sm:$0xff] }
  0x11   :  { %703 = vmatpush3.bf16.msra.mxu0 %v700_v13  ;;  %711 = vmatpush3.bf16.msra.mxu1 %v700_v13  ;;  %v38_v19 = vld [vmem:[%s993_s0 + $0xb8] sm:$0xff]  ;;  %v19_v20 = vld [vmem:[%s993_s0 + $0x20] sm:$0xff]  ;;  %v20_v22 = vld [vmem:[%s993_s0 + $0x28] sm:$0xff] }
  0x12   :  { %v39_v21 = vld [vmem:[%s993_s0 + $0xc0] sm:$0xff]  ;;  %v40_v23 = vld [vmem:[%s993_s0 + $0xc8] sm:$0xff]  ;;  %v21_v24 = vld [vmem:[%s993_s0 + $0x30] sm:$0xff] }
  0x13   :  { %v41_v25 = vld [vmem:[%s993_s0 + $0xd0] sm:$0xff]  ;;  %v22_v26 = vld [vmem:[%s993_s0 + $0x38] sm:$0xff]  ;;  %v23_v28 = vld [vmem:[%s993_s0 + $0x40] sm:$0xff] }
  0x14   :  { %632 = vmatmul.mubr.msk.f32.vlgmr.msra.gmra.mrb[0].mxu0 %vm68_vm0, %v16_v14  ;;  %662 = vmatmul.mubr.msk.f32.vlgmr.msra.gmra.mrb[0].mxu1 %vm68_vm0, %v36_v15  ;;  %v42_v27 = vld [vmem:[%s993_s0 + $0xd8] sm:$0xff]  ;;  %v43_v29 = vld [vmem:[%s993_s0 + $0xe0] sm:$0xff]  ;;  %v24_v30 = vld [vmem:[%s993_s0 + $0x48] sm:$0xff] }
  0x15   :  { %634 = vmatprep.mubr.msk.f32.mxu0 %vm68_vm0, %v17_v16  ;;  %664 = vmatprep.mubr.msk.f32.mxu1 %vm68_vm0, %v37_v17  ;;  %v44_v31 = vld [vmem:[%s993_s0 + $0xe8] sm:$0xff]  ;;  %v25_v32 = vld [vmem:[%s993_s0 + $0x50] sm:$0xff]  ;;  %v26_v34 = vld [vmem:[%s993_s0 + $0x58] sm:$0xff] }
  0x16   :  { %v45_v33 = vld [vmem:[%s993_s0 + $0xf0] sm:$0xff]  ;;  %v46_v35 = vld [vmem:[%s993_s0 + $0xf8] sm:$0xff]  ;;  %v27_v36 = vld [vmem:[%s993_s0 + $0x60] sm:$0xff] }
  0x17   :  { %v47_v37 = vld [vmem:[%s993_s0 + $0x100] sm:$0xff]  ;;  %v28_v38 = vld [vmem:[%s993_s0 + $0x68] sm:$0xff]  ;;  %v29_v40 = vld [vmem:[%s993_s0 + $0x70] sm:$0xff] }
  0x18   :  { %635 = vmatmul.mubr.msk.f32.gmra.mrb[2].mxu0 %vm68_vm0, %v18_v18  ;;  %665 = vmatmul.mubr.msk.f32.gmra.mrb[2].mxu1 %vm68_vm0, %v38_v19  ;;  %v48_v39 = vld [vmem:[%s993_s0 + $0x108] sm:$0xff]  ;;  %v49_v41 = vld [vmem:[%s993_s0 + $0x110] sm:$0xff]  ;;  %v30_v42 = vld [vmem:[%s993_s0 + $0x78] sm:$0xff] }
  0x19   :  { %637 = vmatprep.mubr.msk.f32.mxu0 %vm68_vm0, %v19_v20  ;;  %667 = vmatprep.mubr.msk.f32.mxu1 %vm68_vm0, %v39_v21  ;;  %v50_v43 = vld [vmem:[%s993_s0 + $0x118] sm:$0xff]  ;;  %v31_v44 = vld [vmem:[%s993_s0 + $0x80] sm:$0xff]  ;;  %v32_v46 = vld [vmem:[%s993_s0 + $0x88] sm:$0xff] }
  0x1a   :  { %v51_v45 = vld [vmem:[%s993_s0 + $0x120] sm:$0xff]  ;;  %v52_v47 = vld [vmem:[%s993_s0 + $0x128] sm:$0xff]  ;;  %v33_v48 = vld [vmem:[%s993_s0 + $0x90] sm:$0xff] }
  0x1b   :  { %v34_v49 = vld [vmem:[%s993_s0 + $0x98] sm:$0xff]  ;;  %v941_v50 = vld [vmem:[%s995_s2] ss:$0 sm:$0xff]  ;;  %s739_s0 = smov [#allocation2]  }
  0x1c   :  { %638 = vmatmul.mubr.msk.f32.gmra.mrb[4].mxu0 %vm68_vm0, %v20_v22  ;;  %668 = vmatmul.mubr.msk.f32.gmra.mrb[4].mxu1 %vm68_vm0, %v40_v23  ;;  %s519_s2 = sshll.u32 %s739_s0, 4  ;;  %s520_s2 = int_to_ptr.vmem [resolvable:$true] %s519_s2 }
  0x1d   :  { %640 = vmatprep.mubr.msk.f32.mxu0 %vm68_vm0, %v21_v24  ;;  %670 = vmatprep.mubr.msk.f32.mxu1 %vm68_vm0, %v41_v25  ;;  %s715_s22 = scalar_lea.vmem %s520_s2, 4864  ;;  %p720_p1 = scmp.lt.s32.totalorder %s520_s2, %s520_s2 }
  0x1e   :  { %p716_p0 = scmp.ne.s32.totalorder %s520_s2, %s715_s22  ;;  %p721_p2 = scmp.lt.s32.totalorder %s715_s22, %s715_s22 }
  0x20   :  { %641 = vmatmul.mubr.msk.f32.gmra.mrb[6].mxu0 %vm68_vm0, %v22_v26  ;;  %671 = vmatmul.mubr.msk.f32.gmra.mrb[6].mxu1 %vm68_vm0, %v42_v27  ;;  %p722_p3 = por %p721_p2, %p720_p1 }
  0x21   :  { %643 = vmatprep.mubr.msk.f32.mxu0 %vm68_vm0, %v23_v28  ;;  %673 = vmatprep.mubr.msk.f32.mxu1 %vm68_vm0, %v43_v29 }
  0x22   :  { %p723_p4 = pnand %p722_p3, %p716_p0 }
  0x24   :  { %644 = vmatmul.mubr.msk.f32.gmra.mrb[8].mxu0 %vm68_vm0, %v24_v30  ;;  %674 = vmatmul.mubr.msk.f32.gmra.mrb[8].mxu1 %vm68_vm0, %v44_v31 }
  0x25   :  { %646 = vmatprep.mubr.msk.f32.mxu0 %vm68_vm0, %v25_v32  ;;  %676 = vmatprep.mubr.msk.f32.mxu1 %vm68_vm0, %v45_v33 }
  0x28   :  { %647 = vmatmul.mubr.msk.f32.gmra.mrb[10].mxu0 %vm68_vm0, %v26_v34  ;;  %677 = vmatmul.mubr.msk.f32.gmra.mrb[10].mxu1 %vm68_vm0, %v46_v35 }
  0x29   :  { %649 = vmatprep.mubr.msk.f32.mxu0 %vm68_vm0, %v27_v36  ;;  %679 = vmatprep.mubr.msk.f32.mxu1 %vm68_vm0, %v47_v37 }
  0x2c   :  { %650 = vmatmul.mubr.msk.f32.gmra.mrb[12].mxu0 %vm68_vm0, %v28_v38  ;;  %680 = vmatmul.mubr.msk.f32.gmra.mrb[12].mxu1 %vm68_vm0, %v48_v39 }
  0x2d   :  { %652 = vmatprep.mubr.msk.f32.mxu0 %vm68_vm0, %v29_v40  ;;  %682 = vmatprep.mubr.msk.f32.mxu1 %vm68_vm0, %v49_v41 }
  0x30   :  { %653 = vmatmul.mubr.msk.f32.gmra.mrb[14].mxu0 %vm68_vm0, %v30_v42  ;;  %683 = vmatmul.mubr.msk.f32.gmra.mrb[14].mxu1 %vm68_vm0, %v50_v43 }
  0x31   :  { %655 = vmatprep.mubr.msk.f32.mxu0 %vm68_vm0, %v31_v44  ;;  %685 = vmatprep.mubr.msk.f32.mxu1 %vm68_vm0, %v51_v45 }
  0x34   :  { %656 = vmatmul.mubr.msk.f32.gmra.mrb[16].mxu0 %vm68_vm0, %v32_v46  ;;  %686 = vmatmul.mubr.msk.f32.gmra.mrb[16].mxu1 %vm68_vm0, %v52_v47 }
  0x35   :  { %658 = vmatprep.mubr.msk.f32.mxu0 %vm68_vm0, %v33_v48 }
  0x38   :  { %659 = vmatmul.mubr.msk.f32.gmra.mrb[18].mxu0 %vm68_vm0, %v34_v49 }
  0xe7   :  { %v633_v51 = vpop.f32.mrb[0].mxu0  ;;  %v663_v52 = vpop.f32.mrb[0].mxu1 }
  0xe8   :  { %v255_v53 = vadd.f32 %v633_v51, %v941_v50  ;;  %v249_v54 = vpop.f32.mrb[1].mxu0  ;;  %v355_v55 = vadd.f32 %v663_v52, %v941_v50  ;;  %v349_v56 = vpop.f32.mrb[1].mxu1 }
  0xe9   :  { %v250_v57 = vadd.f32 %v941_v50, %v249_v54  ;;  %v350_v58 = vadd.f32 %v941_v50, %v349_v56 }
  0xea   :  { %v439_v59 = vmul.f32 200.0, %v255_v53  ;;  %v459_v60 = vmul.f32 200.0, %v355_v55 }
  0xeb   :  { %v438_v61 = vmul.f32 200.0, %v250_v57  ;;  %v636_v62 = vpop.f32.mrb[2].mxu0  ;;  %v458_v63 = vmul.f32 200.0, %v350_v58  ;;  %v666_v0 = vpop.f32.mrb[2].mxu1 }
  0xec   :  { %477 = vst [vmem:[#allocation2 + $0x8] sm:$0xff] %v439_v59  ;;  %497 = vst [vmem:[#allocation2 + $0xa8] sm:$0xff] %v459_v60  ;;  %v265_v1 = vadd.f32 %v636_v62, %v941_v50  ;;  %v259_v2 = vpop.f32.mrb[3].mxu0  ;;  %v365_v3 = vadd.f32 %v666_v0, %v941_v50  ;;  %v359_v4 = vpop.f32.mrb[3].mxu1 }
  0xed   :  { %476 = vst [vmem:[#allocation2] sm:$0xff] %v438_v61  ;;  %496 = vst [vmem:[#allocation2 + $0xa0] sm:$0xff] %v458_v63  ;;  %v260_v5 = vadd.f32 %v941_v50, %v259_v2  ;;  %v360_v6 = vadd.f32 %v941_v50, %v359_v4 }
  0xee   :  { %v441_v7 = vmul.f32 200.0, %v265_v1  ;;  %v461_v8 = vmul.f32 200.0, %v365_v3 }
  0xef   :  { %v440_v9 = vmul.f32 200.0, %v260_v5  ;;  %v639_v10 = vpop.f32.mrb[4].mxu0  ;;  %v460_v11 = vmul.f32 200.0, %v360_v6  ;;  %v669_v12 = vpop.f32.mrb[4].mxu1 }
  0xf0   :  { %479 = vst [vmem:[#allocation2 + $0x18] sm:$0xff] %v441_v7  ;;  %499 = vst [vmem:[#allocation2 + $0xb8] sm:$0xff] %v461_v8  ;;  %v275_v13 = vadd.f32 %v639_v10, %v941_v50  ;;  %v269_v14 = vpop.f32.mrb[5].mxu0  ;;  %v375_v15 = vadd.f32 %v669_v12, %v941_v50  ;;  %v369_v16 = vpop.f32.mrb[5].mxu1 }
  0xf1   :  { %478 = vst [vmem:[#allocation2 + $0x10] sm:$0xff] %v440_v9  ;;  %498 = vst [vmem:[#allocation2 + $0xb0] sm:$0xff] %v460_v11  ;;  %v270_v17 = vadd.f32 %v941_v50, %v269_v14  ;;  %v370_v18 = vadd.f32 %v941_v50, %v369_v16 }
  0xf2   :  { %v443_v19 = vmul.f32 200.0, %v275_v13  ;;  %v463_v20 = vmul.f32 200.0, %v375_v15 }
  0xf3   :  { %v442_v21 = vmul.f32 200.0, %v270_v17  ;;  %v642_v22 = vpop.f32.mrb[6].mxu0  ;;  %v462_v23 = vmul.f32 200.0, %v370_v18  ;;  %v672_v24 = vpop.f32.mrb[6].mxu1 }
  0xf4   :  { %481 = vst [vmem:[#allocation2 + $0x28] sm:$0xff] %v443_v19  ;;  %501 = vst [vmem:[#allocation2 + $0xc8] sm:$0xff] %v463_v20  ;;  %v285_v25 = vadd.f32 %v642_v22, %v941_v50  ;;  %v279_v26 = vpop.f32.mrb[7].mxu0  ;;  %v385_v27 = vadd.f32 %v672_v24, %v941_v50  ;;  %v379_v28 = vpop.f32.mrb[7].mxu1 }
  0xf5   :  { %480 = vst [vmem:[#allocation2 + $0x20] sm:$0xff] %v442_v21  ;;  %500 = vst [vmem:[#allocation2 + $0xc0] sm:$0xff] %v462_v23  ;;  %v280_v29 = vadd.f32 %v941_v50, %v279_v26  ;;  %v380_v30 = vadd.f32 %v941_v50, %v379_v28 }
  0xf6   :  { %v445_v31 = vmul.f32 200.0, %v285_v25  ;;  %v465_v32 = vmul.f32 200.0, %v385_v27 }
  0xf7   :  { %v444_v33 = vmul.f32 200.0, %v280_v29  ;;  %v645_v34 = vpop.f32.mrb[8].mxu0  ;;  %v464_v35 = vmul.f32 200.0, %v380_v30  ;;  %v675_v36 = vpop.f32.mrb[8].mxu1 }
  0xf8   :  { %483 = vst [vmem:[#allocation2 + $0x38] sm:$0xff] %v445_v31  ;;  %503 = vst [vmem:[#allocation2 + $0xd8] sm:$0xff] %v465_v32  ;;  %v295_v37 = vadd.f32 %v645_v34, %v941_v50  ;;  %v289_v38 = vpop.f32.mrb[9].mxu0  ;;  %v395_v39 = vadd.f32 %v675_v36, %v941_v50  ;;  %v389_v40 = vpop.f32.mrb[9].mxu1 }
  0xf9   :  { %482 = vst [vmem:[#allocation2 + $0x30] sm:$0xff] %v444_v33  ;;  %502 = vst [vmem:[#allocation2 + $0xd0] sm:$0xff] %v464_v35  ;;  %v290_v41 = vadd.f32 %v941_v50, %v289_v38  ;;  %v390_v42 = vadd.f32 %v941_v50, %v389_v40 }
  0xfa   :  { %v447_v43 = vmul.f32 200.0, %v295_v37  ;;  %v467_v44 = vmul.f32 200.0, %v395_v39 }
  0xfb   :  { %v446_v45 = vmul.f32 200.0, %v290_v41  ;;  %v648_v46 = vpop.f32.mrb[10].mxu0  ;;  %v466_v47 = vmul.f32 200.0, %v390_v42  ;;  %v678_v48 = vpop.f32.mrb[10].mxu1 }
  0xfc   :  { %485 = vst [vmem:[#allocation2 + $0x48] sm:$0xff] %v447_v43  ;;  %505 = vst [vmem:[#allocation2 + $0xe8] sm:$0xff] %v467_v44  ;;  %v305_v49 = vadd.f32 %v648_v46, %v941_v50  ;;  %v299_v51 = vpop.f32.mrb[11].mxu0  ;;  %v405_v52 = vadd.f32 %v678_v48, %v941_v50  ;;  %v399_v53 = vpop.f32.mrb[11].mxu1 }
  0xfd   :  { %484 = vst [vmem:[#allocation2 + $0x40] sm:$0xff] %v446_v45  ;;  %504 = vst [vmem:[#allocation2 + $0xe0] sm:$0xff] %v466_v47  ;;  %v300_v54 = vadd.f32 %v941_v50, %v299_v51  ;;  %v400_v55 = vadd.f32 %v941_v50, %v399_v53 }
  0xfe   :  { %v449_v56 = vmul.f32 200.0, %v305_v49  ;;  %v469_v57 = vmul.f32 200.0, %v405_v52 }
  0xff   :  { %v448_v58 = vmul.f32 200.0, %v300_v54  ;;  %v651_v59 = vpop.f32.mrb[12].mxu0  ;;  %v468_v60 = vmul.f32 200.0, %v400_v55  ;;  %v681_v61 = vpop.f32.mrb[12].mxu1 }
 0x100   :  { %487 = vst [vmem:[#allocation2 + $0x58] sm:$0xff] %v449_v56  ;;  %507 = vst [vmem:[#allocation2 + $0xf8] sm:$0xff] %v469_v57  ;;  %v315_v62 = vadd.f32 %v651_v59, %v941_v50  ;;  %v309_v63 = vpop.f32.mrb[13].mxu0  ;;  %v415_v0 = vadd.f32 %v681_v61, %v941_v50  ;;  %v409_v1 = vpop.f32.mrb[13].mxu1 }
 0x101   :  { %486 = vst [vmem:[#allocation2 + $0x50] sm:$0xff] %v448_v58  ;;  %506 = vst [vmem:[#allocation2 + $0xf0] sm:$0xff] %v468_v60  ;;  %v310_v2 = vadd.f32 %v941_v50, %v309_v63  ;;  %v410_v3 = vadd.f32 %v941_v50, %v409_v1 }
 0x102   :  { %v451_v4 = vmul.f32 200.0, %v315_v62  ;;  %v471_v5 = vmul.f32 200.0, %v415_v0 }
 0x103   :  { %v450_v6 = vmul.f32 200.0, %v310_v2  ;;  %v654_v7 = vpop.f32.mrb[14].mxu0  ;;  %v470_v8 = vmul.f32 200.0, %v410_v3  ;;  %v684_v9 = vpop.f32.mrb[14].mxu1 }
 0x104   :  { %489 = vst [vmem:[#allocation2 + $0x68] sm:$0xff] %v451_v4  ;;  %509 = vst [vmem:[#allocation2 + $0x108] sm:$0xff] %v471_v5  ;;  %v325_v10 = vadd.f32 %v654_v7, %v941_v50  ;;  %v319_v11 = vpop.f32.mrb[15].mxu0  ;;  %v425_v12 = vadd.f32 %v684_v9, %v941_v50  ;;  %v419_v13 = vpop.f32.mrb[15].mxu1 }
 0x105   :  { %488 = vst [vmem:[#allocation2 + $0x60] sm:$0xff] %v450_v6  ;;  %508 = vst [vmem:[#allocation2 + $0x100] sm:$0xff] %v470_v8  ;;  %v320_v14 = vadd.f32 %v941_v50, %v319_v11  ;;  %v420_v15 = vadd.f32 %v941_v50, %v419_v13 }
 0x106   :  { %v453_v16 = vmul.f32 200.0, %v325_v10  ;;  %v473_v17 = vmul.f32 200.0, %v425_v12 }
 0x107   :  { %v452_v18 = vmul.f32 200.0, %v320_v14  ;;  %v657_v19 = vpop.f32.mrb[16].mxu0  ;;  %v472_v20 = vmul.f32 200.0, %v420_v15  ;;  %v687_v21 = vpop.f32.mrb[16].mxu1 }
 0x108   :  { %491 = vst [vmem:[#allocation2 + $0x78] sm:$0xff] %v453_v16  ;;  %511 = vst [vmem:[#allocation2 + $0x118] sm:$0xff] %v473_v17  ;;  %v335_v22 = vadd.f32 %v657_v19, %v941_v50  ;;  %v329_v23 = vpop.f32.mrb[17].mxu0  ;;  %v435_v24 = vadd.f32 %v687_v21, %v941_v50  ;;  %v429_v25 = vpop.f32.mrb[17].mxu1 }
 0x109   :  { %490 = vst [vmem:[#allocation2 + $0x70] sm:$0xff] %v452_v18  ;;  %510 = vst [vmem:[#allocation2 + $0x110] sm:$0xff] %v472_v20  ;;  %v330_v26 = vadd.f32 %v941_v50, %v329_v23  ;;  %v430_v27 = vadd.f32 %v941_v50, %v429_v25 }
 0x10a   :  { %v455_v28 = vmul.f32 200.0, %v335_v22  ;;  %v475_v29 = vmul.f32 200.0, %v435_v24 }
 0x10b   :  { %v454_v30 = vmul.f32 200.0, %v330_v26  ;;  %v660_v31 = vpop.f32.mrb[18].mxu0  ;;  %v474_v32 = vmul.f32 200.0, %v430_v27 }
 0x10c   :  { %493 = vst [vmem:[#allocation2 + $0x88] sm:$0xff] %v455_v28  ;;  %513 = vst [vmem:[#allocation2 + $0x128] sm:$0xff] %v475_v29  ;;  %v345_v33 = vadd.f32 %v660_v31, %v941_v50  ;;  %v339_v34 = vpop.f32.mrb[19].mxu0 }
 0x10d   :  { %492 = vst [vmem:[#allocation2 + $0x80] sm:$0xff] %v454_v30  ;;  %512 = vst [vmem:[#allocation2 + $0x120] sm:$0xff] %v474_v32  ;;  %v340_v35 = vadd.f32 %v941_v50, %v339_v34 }
 0x10e   :  { %v457_v36 = vmul.f32 200.0, %v345_v33 }
 0x10f   :  { %v456_v37 = vmul.f32 200.0, %v340_v35 }
 0x110   :  { %495 = vst [vmem:[#allocation2 + $0x98] sm:$0xff] %v457_v36 }
 0x111   :  { %494 = vst [vmem:[#allocation2 + $0x90] sm:$0xff] %v456_v37 }
 0x112   :  { %726 = shalt.err (!%p723_p4)
}
 0x113   :  { %s727_s25 = scalar_lea.hbm %s996_s3, 4864 }
 0x114   :  { %p728_p5 = scmp.ne.s32.totalorder %s996_s3, %s727_s25  ;;  %p731_p6 = scmp.lt.u32.totalorder %s727_s25, %s996_s3 }
 0x116   :  { %p733_p7 = pnand %p731_p6, %p728_p5 }
 0x118   :  { %736 = shalt.err (!%p733_p7)
}
 0x119   :  { %s740_s30 = smov 128   ;;  %s741_s4 = smov 8  }
 0x11a   :  { %525 = dma.vmem_to_hbm [thread:$0]  %s520_s2, 4864, %s996_s3, [#allocation3], %s740_s30, %s740_s30, %s741_s4  }
 0x11b   :  { %737 = dma.done.wait [#allocation3], 4864  }
 0x11c   :  { %738 = vsyncadd [#allocation3], 4294962432 }
 0x11d   :  { %529 = vsyncpa [#allocation3], 1 }

</bundles_post_ra>
